<compile_context>
chip_gen: v6e
topology: v6e:2x2x1
jax: 0.10.0
libtpu: 0.0.40
codegen_flags: <defaults>
</compile_context>

<pallas_src>
import functools
import math

import jax
import jax.numpy as jnp
from jax.experimental import pallas as pl
from jax.experimental.pallas import tpu as pltpu

EPS = 1e-6
_LANES = 128
_MAX_TILE_BYTES = 8 * 1024 * 1024  # per pipeline buffer


def _vmem_limit_bytes():
    """Generation-aware scoped-VMEM limit: ~3/4 of per-core VMEM
    (48 MiB on v7x's 64 MiB, 96 MiB on v5e/v6e's 128 MiB)."""
    cap = 64 * 1024 * 1024  # conservative default (v7x per-TC)
    try:
        info = pltpu.get_tpu_info()
        cap = int(getattr(info, "vmem_capacity_bytes", cap) or cap)
    except Exception:
        pass
    return min((cap * 3) // 4, 96 * 1024 * 1024)


def _sublane(dtype):
    # f32 -> 8, bf16/f16 -> 16, int8/fp8 -> 32 (sub-32-bit packs along sublanes).
    return 8 * (4 // jnp.dtype(dtype).itemsize)


def _pick_row_tile(n_rows, width, dtype, budget):
    """Largest sublane-aligned row tile whose double-buffered in+out pipeline
    buffers plus f32 kernel temporaries fit `budget` (no hard row cap)."""
    sub = _sublane(dtype)
    itemsize = jnp.dtype(dtype).itemsize
    w_pad = pl.cdiv(width, _LANES) * _LANES          # lane padding in VMEM
    # 2 (in+out) x 2 (double buffer) dtype tiles + ~4 f32 temporaries per row.
    bytes_per_row = 2 * 2 * w_pad * itemsize + 4 * w_pad * 4
    tm = budget // max(bytes_per_row, 1)
    tm = min(tm, _MAX_TILE_BYTES // max(w_pad * itemsize, 1))
    tm = max(sub, (tm // sub) * sub)
    n_up = pl.cdiv(n_rows, sub) * sub                # don't tile past the data
    return min(tm, n_up)


def _ln_rows_kernel(alpha_ref, bias_ref, x_ref, o_ref):
    """One normalization group per row: reduce over the last (lane) dim."""
    x = x_ref[...].astype(jnp.float32)               # (tm, d)
    d = x.shape[-1]
    mean = jnp.mean(x, axis=-1, keepdims=True)
    diff = x - mean
    var = jnp.sum(diff * diff, axis=-1, keepdims=True) * jnp.float32(1.0 / (d - 1))
    # Per-row (tm,1) column: sqrt + reciprocal on EUP, alpha folded in so the
    # (tm,d) path is a single multiply-add.
    inv = pl.reciprocal(jnp.sqrt(var) + jnp.float32(EPS), approx=False)
    scale = alpha_ref[0].astype(jnp.float32) * inv
    shift = bias_ref[0].astype(jnp.float32)
    o_ref[...] = (diff * scale + shift).astype(o_ref.dtype)


def _ln_packed_kernel(alpha_ref, bias_ref, p_ref, x_ref, o_ref, *, d):
    """g = 128//d rows packed per lane-row.  Segmented lane reductions via MXU
    matmuls against the block-diagonal averaging matrix P (P[i,j] = 1/d when
    i//d == j//d): everything stays lane-dense with no in-kernel relayouts.
    Full-width sqrt/recip rides the otherwise idle EUP slot."""
    x = x_ref[...].astype(jnp.float32)               # (tm, g*d)
    p = p_ref[...]                                   # (g*d, g*d)
    hi = jax.lax.Precision.HIGHEST                   # exact f32 segment sums
    mean = jnp.dot(x, p, preferred_element_type=jnp.float32, precision=hi)
    diff = x - mean
    var = jnp.dot(diff * diff, p, preferred_element_type=jnp.float32,
                  precision=hi) * jnp.float32(d / (d - 1))
    inv = pl.reciprocal(jnp.sqrt(var) + jnp.float32(EPS), approx=False)
    scale = alpha_ref[0].astype(jnp.float32) * inv
    shift = bias_ref[0].astype(jnp.float32)
    o_ref[...] = (diff * scale + shift).astype(o_ref.dtype)


def _ln_call(kernel, inputs, in_specs, x2, tm, *, flops, transcendentals, vmem_limit):
    m, w = x2.shape
    itemsize = jnp.dtype(x2.dtype).itemsize
    return pl.pallas_call(
        kernel,
        out_shape=jax.ShapeDtypeStruct((m, w), x2.dtype),
        grid_spec=pltpu.PrefetchScalarGridSpec(
            num_scalar_prefetch=0,
            grid=(pl.cdiv(m, tm),),                  # partial last block masked
            in_specs=list(in_specs) + [pl.BlockSpec((tm, w), lambda i: (i, 0))],
            out_specs=pl.BlockSpec((tm, w), lambda i: (i, 0)),
        ),
        compiler_params=pltpu.CompilerParams(
            dimension_semantics=("parallel",),
            vmem_limit_bytes=vmem_limit,
        ),
        cost_estimate=pl.CostEstimate(
            flops=int(flops),
            transcendentals=int(transcendentals),
            bytes_accessed=int(2 * m * w * itemsize),
        ),
    )(*inputs, x2)


@jax.jit
def layer_normalization(x, alpha, bias):
    """LayerNormalization.forward for x of shape (..., D)."""
    d = x.shape[-1]
    assert d >= 2, "unbiased std (ddof=1) needs at least 2 elements per row"
    n = math.prod(x.shape[:-1])
    x2 = x.reshape(n, d)
    vmem_limit = _vmem_limit_bytes()
    budget = vmem_limit // 2

    smem = pl.BlockSpec(memory_space=pltpu.MemorySpace.SMEM)
    g = _LANES // d if (d < _LANES and _LANES % d == 0) else 1

    if g > 1 and n % g == 0:
        # Lane-dense packed path: g rows per 128-lane row (free reshape).
        m, gd = n // g, g * d
        xp = x2.reshape(m, gd)
        seg_i = jax.lax.broadcasted_iota(jnp.int32, (gd, gd), 0) // d
        seg_j = jax.lax.broadcasted_iota(jnp.int32, (gd, gd), 1) // d
        p = jnp.where(seg_i == seg_j, jnp.float32(1.0 / d), jnp.float32(0.0))
        tm = _pick_row_tile(m, gd, x.dtype, budget)
        out = _ln_call(
            functools.partial(_ln_packed_kernel, d=d),
            [alpha, bias, p],
            [smem, smem, pl.BlockSpec((gd, gd), lambda i: (0, 0))],
            xp, tm,
            flops=m * (4 * gd * gd + 6 * gd),
            transcendentals=2 * m * gd,
            vmem_limit=vmem_limit,
        )
        return out.reshape(x.shape)

    # Fallback: one group per block row (lane-sparse when d < 128; production
    # D should be a multiple of 128 for an unmasked vst path).
    tm = _pick_row_tile(n, d, x.dtype, budget)
    out = _ln_call(
        _ln_rows_kernel,
        [alpha, bias],
        [smem, smem],
        x2, tm,
        flops=7 * n * d,
        transcendentals=2 * n,
        vmem_limit=vmem_limit,
    )
    return out.reshape(x.shape)


def encoder_forward(x, mask, layers, norm_params):
    """Encoder.forward: apply each layer(x, mask), then LayerNormalization."""
    # TODO(synk): the nn.ModuleList contents are external to the Encoder
    # definition; identity here.
    for layer in layers:
        x = layer(x, mask)
    alpha, bias = norm_params
    return layer_normalization(x, alpha, bias)


if __name__ == "__main__":
    key = jax.random.PRNGKey(0)
    B, S, D = 2, 8, 32  # small shapes consistent with a transformer encoder

    kx, _ = jax.random.split(key)
    x = jax.random.normal(kx, (B, S, D), dtype=jnp.float32)
    mask = jnp.ones((B, 1, S, S), dtype=jnp.float32)  # unused by identity layers

    # Deterministic parameter init matching LayerNormalization.__init__:
    alpha = jnp.ones((1,), dtype=jnp.float32)
    bias = jnp.zeros((1,), dtype=jnp.float32)
    layers = []  # nn.ModuleList contents are external to the Encoder definition

    def ref_ln(v):
        mean = jnp.mean(v, axis=-1, keepdims=True)
        std = jnp.std(v, axis=-1, keepdims=True, ddof=1)
        return alpha[0] * (v - mean) / (std + EPS) + bias[0]

    # Packed lane-dense path (16 rows, g = 4).
    out = jax.block_until_ready(encoder_forward(x, mask, layers, (alpha, bias)))
    assert out.shape == x.shape
    assert jnp.allclose(out, ref_ln(x), atol=1e-5, rtol=1e-5), "packed path mismatch"

    # Row count not divisible by the packing factor -> fallback path with a
    # masked partial last block (no pad / slice round trip).
    x_odd = jax.random.normal(kx, (3, 5, D), dtype=jnp.float32)
    out_odd = jax.block_until_ready(layer_normalization(x_odd, alpha, bias))
    assert jnp.allclose(out_odd, ref_ln(x_odd), atol=1e-5, rtol=1e-5), "fallback mismatch"

    # Lane-dense D (multiple of 128) plain path with a partial row block.
    x_128 = jax.random.normal(kx, (2, 3, 128), dtype=jnp.float32)
    out_128 = jax.block_until_ready(layer_normalization(x_128, alpha, bias))
    assert jnp.allclose(out_128, ref_ln(x_128), atol=1e-5, rtol=1e-5), "d=128 mismatch"

    print("KERNEL_OK")
</pallas_src>

<mosaic_0001>
module attributes {stable_mosaic.version = 11 : i64} {
  func.func @_ln_packed_kernel(%arg0: i32, %arg1: memref<1xf32, #tpu.memory_space<smem>>, %arg2: memref<1xf32, #tpu.memory_space<smem>>, %arg3: memref<128x128xf32, #tpu.memory_space<vmem>>, %arg4: memref<8x128xf32, #tpu.memory_space<vmem>>, %arg5: memref<8x128xf32, #tpu.memory_space<vmem>>) attributes {dimension_semantics = [#tpu.dimension_semantics<parallel>], iteration_bounds = array<i64: 1>, scalar_prefetch = 0 : i64, scratch_operands = 0 : i64, tpu.core_type = #tpu.core_type<tc>, window_params = [{transform_indices = @transform_0, window_bounds = array<i64: 1>}, {transform_indices = @transform_1, window_bounds = array<i64: 1>}, {pipeline_mode = #tpu.pipeline_mode<synchronous>, transform_indices = @transform_2, window_bounds = array<i64: 128, 128>}, {transform_indices = @transform_3, window_bounds = array<i64: 8, 128>}, {transform_indices = @transform_4, window_bounds = array<i64: 8, 128>}]} {
    %c0 = arith.constant 0 : index
    %c0_0 = arith.constant 0 : index
    %0 = vector.load %arg4[%c0, %c0_0] : memref<8x128xf32, #tpu.memory_space<vmem>>, vector<8x128xf32>
    %c0_1 = arith.constant 0 : index
    %c0_2 = arith.constant 0 : index
    %1 = vector.load %arg3[%c0_1, %c0_2] : memref<128x128xf32, #tpu.memory_space<vmem>>, vector<128x128xf32>
    %cst = arith.constant dense<0.000000e+00> : vector<8x128xf32>
    %2 = tpu.matmul %0, %1, %cst {dimension_numbers = #tpu.dot_dimension_numbers<[1], [0], [0], [1], [0, 0, 1, 1], [], []>, precision = #tpu.contract_precision<fp32>} : vector<8x128xf32>, vector<128x128xf32>, vector<8x128xf32> -> vector<8x128xf32>
    %3 = arith.subf %0, %2 : vector<8x128xf32>
    %4 = arith.mulf %3, %3 : vector<8x128xf32>
    %cst_3 = arith.constant dense<0.000000e+00> : vector<8x128xf32>
    %5 = tpu.matmul %4, %1, %cst_3 {dimension_numbers = #tpu.dot_dimension_numbers<[1], [0], [0], [1], [0, 0, 1, 1], [], []>, precision = #tpu.contract_precision<fp32>} : vector<8x128xf32>, vector<128x128xf32>, vector<8x128xf32> -> vector<8x128xf32>
    %cst_4 = arith.constant 1.03225803 : f32
    %6 = vector.broadcast %cst_4 : f32 to vector<8x128xf32>
    %7 = arith.mulf %5, %6 : vector<8x128xf32>
    %8 = math.sqrt %7 : vector<8x128xf32>
    %cst_5 = arith.constant 9.99999997E-7 : f32
    %9 = vector.broadcast %cst_5 : f32 to vector<8x128xf32>
    %10 = arith.addf %8, %9 : vector<8x128xf32>
    %11 = tpu.reciprocal %10 : vector<8x128xf32> -> vector<8x128xf32>
    %c0_6 = arith.constant 0 : index
    %12 = memref.load %arg1[%c0_6] : memref<1xf32, #tpu.memory_space<smem>>
    %13 = vector.broadcast %12 : f32 to vector<8x128xf32>
    %14 = arith.mulf %13, %11 : vector<8x128xf32>
    %c0_7 = arith.constant 0 : index
    %15 = memref.load %arg2[%c0_7] : memref<1xf32, #tpu.memory_space<smem>>
    %16 = arith.mulf %3, %14 : vector<8x128xf32>
    %17 = vector.broadcast %15 : f32 to vector<8x128xf32>
    %18 = arith.addf %16, %17 : vector<8x128xf32>
    %c0_8 = arith.constant 0 : index
    %c0_9 = arith.constant 0 : index
    %19 = vector.load %arg5[%c0_8, %c0_9] : memref<8x128xf32, #tpu.memory_space<vmem>>, vector<8x128xf32>
    tpu.vector_store %arg5[%c0_8, %c0_9], %18 {strides = array<i32>} : memref<8x128xf32, #tpu.memory_space<vmem>>, vector<8x128xf32>,
    return
  }
  func.func @transform_0(%arg0: i32) -> i32 {
    %c0_i32 = arith.constant 0 : i32
    %c0_i32_0 = arith.constant 0 : i32
    return %c0_i32 : i32
  }
  func.func @transform_1(%arg0: i32) -> i32 {
    %c0_i32 = arith.constant 0 : i32
    %c0_i32_0 = arith.constant 0 : i32
    return %c0_i32 : i32
  }
  func.func @transform_2(%arg0: i32) -> (i32, i32) {
    %c0_i32 = arith.constant 0 : i32
    %c0_i32_0 = arith.constant 0 : i32
    %c0_i32_1 = arith.constant 0 : i32
    return %c0_i32, %c0_i32_0 : i32, i32
  }
  func.func @transform_3(%arg0: i32) -> (i32, i32) {
    %c0_i32 = arith.constant 0 : i32
    %c0_i32_0 = arith.constant 0 : i32
    return %arg0, %c0_i32 : i32, i32
  }
  func.func @transform_4(%arg0: i32) -> (i32, i32) {
    %c0_i32 = arith.constant 0 : i32
    %c0_i32_0 = arith.constant 0 : i32
    return %arg0, %c0_i32 : i32, i32
  }
}

</mosaic_0001>

<bundles_post_ra>
// kernel: layer_normalization.1
= control target key start
LH: loop header
LB: loop body
LE: loop exit
PB: predicated region body
PF: predicated region fallthrough
CT: control target
= control target key end

     0   :  { %v2009_v3 = vmov 0.0   ;;  %vm2010_vm0 = vmmov 0   ;;  %s2732_s0 = inlined_call_operand.<no memory space> [shape: f32[1], index: 0, kind: input, shape index: {}]   ;;  %s2733_s1 = inlined_call_operand.<no memory space> [shape: f32[1], index: 1, kind: input, shape index: {}]   ;;  %s2734_s2 = inlined_call_operand.vmem [shape: f32[128,128], index: 2, kind: input, shape index: {}]   ;;  %s2735_s3 = inlined_call_operand.vmem [shape: f32[4,128], index: 3, kind: input, shape index: {}]   ;;  %s2736_s4 = inlined_call_operand.vmem [shape: f32[4,128], index: 4, kind: output, shape index: {}]  }
   0x1   :  { %v35_v0 = vld [vmem:[%s2734_s2 + $0x78] sm:$0xff]  ;;  %v34_v1 = vld [vmem:[%s2734_s2 + $0x70] sm:$0xff]  ;;  %v33_v2 = vld [vmem:[%s2734_s2 + $0x68] sm:$0xff]  ;;  %1583 = vmatprep.subr.mxu0 %v2009_v3  ;;  %1618 = vmatprep.subr.mxu1 %v2009_v3 }
   0x2   :  { %v2046_v4 = vand.u32 4294901760, %v35_v0  ;;  %v2048_v5 = vand.u32 4294901760, %v34_v1  ;;  %v2050_v6 = vand.u32 4294901760, %v33_v2  ;;  %v32_v7 = vld [vmem:[%s2734_s2 + $0x60] sm:$0xff]  ;;  %v31_v8 = vld [vmem:[%s2734_s2 + $0x58] sm:$0xff]  ;;  %v30_v9 = vld [vmem:[%s2734_s2 + $0x50] sm:$0xff]  ;;  %1615 = vmatprep.mubr.msk.f32.mxu0 %vm2010_vm0, %v2009_v3  ;;  %1650 = vmatprep.mubr.msk.f32.mxu1 %vm2010_vm0, %v2009_v3 }
   0x3   :  { %v2062_v10 = vand.u32 4294901760, %v32_v7  ;;  %v2064_v11 = vand.u32 4294901760, %v31_v8  ;;  %v2066_v12 = vand.u32 4294901760, %v30_v9  ;;  %v29_v13 = vld [vmem:[%s2734_s2 + $0x48] sm:$0xff]  ;;  %v28_v14 = vld [vmem:[%s2734_s2 + $0x40] sm:$0xff]  ;;  %v27_v19 = vld [vmem:[%s2734_s2 + $0x38] sm:$0xff] }
   0x4   :  { %1584 = vmatpush3.msra.mxu0 %v2046_v4  ;;  %v2080_v15 = vsub.f32 %v35_v0, %v2046_v4  ;;  %v2083_v16 = vsub.f32 %v34_v1, %v2048_v5  ;;  %v2085_v17 = vand.u32 4294901760, %v29_v13  ;;  %v2088_v18 = vsub.f32 %v33_v2, %v2050_v6  ;;  %v26_v26 = vld [vmem:[%s2734_s2 + $0x30] sm:$0xff]  ;;  %v25_v36 = vld [vmem:[%s2734_s2 + $0x28] sm:$0xff]  ;;  %v24_v41 = vld [vmem:[%s2734_s2 + $0x20] sm:$0xff] }
   0x5   :  { %1585 = vmatprep.subr.mxu0 %v2009_v3  ;;  %v2095_v20 = vsub.f32 %v32_v7, %v2062_v10  ;;  %v2098_v21 = vsub.f32 %v31_v8, %v2064_v11  ;;  %v2110_v25 = vand.u32 4294901760, %v28_v14  ;;  %v2119_v28 = vand.u32 4294901760, %v27_v19  ;;  %v23_v49 = vld [vmem:[%s2734_s2 + $0x18] sm:$0xff]  ;;  %v2184_v50 = vld [vmem:[%s2735_s3] sm:$0xff]  ;;  %v22_v54 = vld [vmem:[%s2734_s2 + $0x10] sm:$0xff] }
   0x6   :  { %1586 = vmatpush3.msra.mxu0 %v2048_v5  ;;  %v2102_v22 = vand.u32 4294901760, %v2080_v15  ;;  %v2105_v23 = vand.u32 4294901760, %v2083_v16  ;;  %v2108_v24 = vand.u32 4294901760, %v2088_v18  ;;  %v2125_v30 = vsub.f32 %v30_v9, %v2066_v12  ;;  %2749 = vst [vmem:[#allocation5_spill] sm:$0xff] %v2184_v50  ;;  %v21_v60 = vld [vmem:[%s2734_s2 + $0x8] sm:$0xff]  ;;  %v20_v7 = vld [vmem:[%s2734_s2] sm:$0xff] }
   0x7   :  { %1587 = vmatprep.subr.mxu0 %v2009_v3  ;;  %v2117_v27 = vand.u32 4294901760, %v2095_v20  ;;  %v2122_v29 = vand.u32 4294901760, %v2098_v21  ;;  %v2135_v34 = vsub.f32 %v29_v13, %v2085_v17  ;;  %v2138_v35 = vand.u32 4294901760, %v26_v26 }
   0x8   :  { %1588 = vmatpush3.msra.mxu0 %v2050_v6  ;;  %v131_v31 = vsub.f32 %v2080_v15, %v2102_v22  ;;  %v138_v32 = vsub.f32 %v2083_v16, %v2105_v23  ;;  %v145_v33 = vsub.f32 %v2088_v18, %v2108_v24  ;;  %v2151_v40 = vand.u32 4294901760, %v2125_v30 }
   0x9   :  { %1589 = vmatprep.subr.mxu0 %v2009_v3  ;;  %v152_v39 = vsub.f32 %v2095_v20, %v2117_v27  ;;  %v159_v42 = vsub.f32 %v2098_v21, %v2122_v29  ;;  %v2160_v43 = vsub.f32 %v28_v14, %v2110_v25  ;;  %v2166_v45 = vand.u32 4294901760, %v25_v36 }
   0xa   :  { %1590 = vmatpush3.msra.mxu0 %v2062_v10  ;;  %v2144_v37 = vand.u32 4294901760, %v131_v31  ;;  %v2146_v38 = vand.u32 4294901760, %v138_v32  ;;  %v2164_v44 = vand.u32 4294901760, %v145_v33  ;;  %v2169_v46 = vand.u32 4294901760, %v2135_v34 }
   0xb   :  { %1591 = vmatprep.subr.mxu0 %v2009_v3  ;;  %v2172_v47 = vsub.f32 %v27_v19, %v2119_v28  ;;  %v2176_v48 = vand.u32 4294901760, %v24_v41  ;;  %v2188_v51 = vand.u32 4294901760, %v152_v39  ;;  %v166_v52 = vsub.f32 %v2125_v30, %v2151_v40 }
   0xc   :  { %1592 = vmatpush3.msra.mxu0 %v2064_v11  ;;  %1619 = vmatpush3.msra.mxu1 %v2144_v37  ;;  %v2193_v53 = vand.u32 4294901760, %v2160_v43  ;;  %v2199_v55 = vsub.f32 %v26_v26, %v2138_v35  ;;  %v2203_v56 = vand.u32 4294901760, %v159_v42  ;;  %v173_v58 = vsub.f32 %v2135_v34, %v2169_v46 }
   0xd   :  { %1593 = vmatprep.subr.mxu0 %v2009_v3  ;;  %1620 = vmatprep.subr.mxu1 %v2009_v3  ;;  %2750 = vst [vmem:[#allocation6_spill] sm:$0xff] %v2188_v51  ;;  %v2206_v57 = vand.u32 4294901760, %v2172_v47  ;;  %v2212_v59 = vand.u32 4294901760, %v23_v49  ;;  %v2218_v61 = vsub.f32 %v25_v36, %v2166_v45  ;;  %v2221_v62 = vand.u32 4294901760, %v2184_v50 }
   0xe   :  { %1594 = vmatpush3.msra.mxu0 %v2066_v12  ;;  %1621 = vmatpush3.msra.mxu1 %v2146_v38  ;;  %2751 = vst [vmem:[#allocation7_spill] sm:$0xff] %v2203_v56  ;;  %v2225_v63 = vand.u32 4294901760, %v22_v54  ;;  %v2229_v0 = vand.u32 4294901760, %v166_v52  ;;  %v180_v1 = vsub.f32 %v2160_v43, %v2193_v53  ;;  %v2234_v2 = vand.u32 4294901760, %v2199_v55 }
   0xf   :  { %1595 = vmatprep.subr.mxu0 %v2009_v3  ;;  %1622 = vmatprep.subr.mxu1 %v2009_v3  ;;  %v2240_v8 = vsub.f32 %v24_v41, %v2176_v48  ;;  %v187_v9 = vsub.f32 %v2172_v47, %v2206_v57  ;;  %v2246_v13 = vand.u32 4294901760, %v21_v60  ;;  %v2250_v14 = vand.u32 4294901760, %v173_v58 }
  0x10   :  { %1596 = vmatpush3.msra.mxu0 %v2085_v17  ;;  %1623 = vmatpush3.msra.mxu1 %v2164_v44  ;;  %2752 = vst [vmem:[#allocation8_spill] sm:$0xff] %v2229_v0  ;;  %v2253_v19 = vand.u32 4294901760, %v2218_v61  ;;  %v2257_v26 = vsub.f32 %v2184_v50, %v2221_v62  ;;  %v2260_v31 = vsub.f32 %v23_v49, %v2212_v59  ;;  %v2264_v32 = vand.u32 4294901760, %v20_v7 }
  0x11   :  { %1597 = vmatprep.subr.mxu0 %v2009_v3  ;;  %1624 = vmatprep.subr.mxu1 %v2009_v3  ;;  %2753 = vst [vmem:[#allocation9_spill] sm:$0xff] %v2250_v14  ;;  %v2268_v33 = vand.u32 4294901760, %v180_v1  ;;  %v194_v36 = vsub.f32 %v2199_v55, %v2234_v2  ;;  %v2273_v39 = vand.u32 4294901760, %v2240_v8  ;;  %v2276_v41 = vsub.f32 %v22_v54, %v2225_v63 }
  0x12   :  { %1598 = vmatpush3.msra.mxu0 %v2110_v25  ;;  %1625 = vmatpush3.msra.mxu1 %v2188_v51  ;;  %v2280_v42 = vand.u32 4294901760, %v187_v9  ;;  %v201_v49 = vsub.f32 %v2218_v61, %v2253_v19  ;;  %v2288_v58 = vand.u32 4294901760, %v2260_v31  ;;  %v2291_v54 = vsub.f32 %v21_v60, %v2246_v13 }
  0x13   :  { %1599 = vmatprep.subr.mxu0 %v2009_v3  ;;  %1626 = vmatprep.subr.mxu1 %v2009_v3  ;;  %2754 = vst [vmem:[#allocation10_spill] sm:$0xff] %v2268_v33  ;;  %v2297_v1 = vand.u32 4294901760, %v194_v36  ;;  %v208_v9 = vsub.f32 %v2240_v8, %v2273_v39  ;;  %v2302_v52 = vand.u32 4294901760, %v2276_v41  ;;  %v2305_v50 = vsub.f32 %v20_v7, %v2264_v32 }
  0x14   :  { %1600 = vmatpush3.msra.mxu0 %v2119_v28  ;;  %1627 = vmatpush3.msra.mxu1 %v2203_v56  ;;  %2755 = vst [vmem:[#allocation11_spill] sm:$0xff] %v2280_v42  ;;  %2756 = vst [vmem:[#allocation12_spill] sm:$0xff] %v2288_v58  ;;  %v2311_v60 = vand.u32 4294901760, %v201_v49  ;;  %v2759_v36 = vand.u32 4294901760, %v2257_v26  ;;  %v2319_v7 = vand.u32 4294901760, %v2291_v54 }
  0x15   :  { %1601 = vmatprep.subr.mxu0 %v2009_v3  ;;  %1628 = vmatprep.subr.mxu1 %v2009_v3  ;;  %2757 = vst [vmem:[#allocation13_spill] sm:$0xff] %v2297_v1  ;;  %2758 = vst [vmem:[#allocation14_spill] sm:$0xff] %v2302_v52  ;;  %v2325_v49 = vand.u32 4294901760, %v208_v9 }
  0x16   :  { %1602 = vmatpush3.msra.mxu0 %v2138_v35  ;;  %1629 = vmatpush3.msra.mxu1 %v2229_v0  ;;  %2760 = vst [vmem:[#allocation15_spill] sm:$0xff] %v2319_v7  ;;  %v229_v9 = vsub.f32 %v2291_v54, %v2319_v7 }
  0x17   :  { %1603 = vmatprep.subr.mxu0 %v2009_v3  ;;  %1630 = vmatprep.subr.mxu1 %v2009_v3 }
  0x18   :  { %1604 = vmatpush3.msra.mxu0 %v2166_v45  ;;  %1631 = vmatpush3.msra.mxu1 %v2250_v14  ;;  %v215_v14 = vsub.f32 %v2260_v31, %v2288_v58 }
  0x19   :  { %1605 = vmatprep.subr.mxu0 %v2009_v3  ;;  %1632 = vmatprep.subr.mxu1 %v2009_v3 }
  0x1a   :  { %1606 = vmatpush3.msra.mxu0 %v2176_v48  ;;  %1633 = vmatpush3.msra.mxu1 %v2268_v33  ;;  %v120_v33 = vsub.f32 %v2257_v26, %v2759_v36  ;;  %v2330_v36 = vand.u32 4294901760, %v2305_v50  ;;  %v2336_v56 = vand.u32 4294901760, %v215_v14  ;;  %v2351_v14 = vand.u32 4294901760, %v229_v9 }
  0x1b   :  { %1607 = vmatprep.subr.mxu0 %v2009_v3  ;;  %1634 = vmatprep.subr.mxu1 %v2009_v3 }
  0x1c   :  { %1608 = vmatpush3.msra.mxu0 %v2212_v59  ;;  %1635 = vmatpush3.msra.mxu1 %v2280_v42  ;;  %v222_v42 = vsub.f32 %v2276_v41, %v2302_v52  ;;  %2761 = vst [vmem:[#allocation16_spill] sm:$0xff] %v2330_v36  ;;  %v121_v0 = vand.u32 4294901760, %v120_v33  ;;  %v236_v51 = vsub.f32 %v2305_v50, %v2330_v36 }
  0x1d   :  { %1609 = vmatprep.subr.mxu0 %v2009_v3  ;;  %1636 = vmatprep.subr.mxu1 %v2009_v3 }
  0x1e   :  { %1610 = vmatpush3.msra.mxu0 %v2225_v63  ;;  %1637 = vmatpush3.msra.mxu1 %v2297_v1  ;;  %v2344_v1 = vand.u32 4294901760, %v222_v42  ;;  %v2357_v33 = vand.u32 4294901760, %v236_v51  ;;  %v2762_v51 = vand.u32 4294901760, %v2257_v26  ;;  %v2769_v42 = vld [vmem:[#allocation13_spill] sm:$0xff] }
  0x1f   :  { %1611 = vmatprep.subr.mxu0 %v2009_v3  ;;  %1638 = vmatprep.subr.mxu1 %v2009_v3 }
  0x20   :  { %1612 = vmatpush3.msra.mxu0 %v2246_v13  ;;  %1639 = vmatpush3.msra.mxu1 %v2311_v60 }
  0x21   :  { %1613 = vmatprep.subr.mxu0 %v2009_v3  ;;  %1640 = vmatprep.subr.mxu1 %v2009_v3 }
  0x22   :  { %1614 = vmatpush3.msra.mxu0 %v2264_v32  ;;  %1641 = vmatpush3.msra.mxu1 %v2325_v49 }
  0x23   :  { %1642 = vmatprep.subr.mxu1 %v2009_v3  ;;  %1653 = vmatprep.subr.mxu0 %v2009_v3 }
  0x24   :  { %1616 = vmatmul.mubr.f32.vlgmr.msra.gmra.mxu0 %v121_v0  ;;  %1643 = vmatpush3.msra.mxu1 %v2336_v56  ;;  %v2767_v0 = vld [vmem:[#allocation10_spill] sm:$0xff] }
  0x25   :  { %1654 = vmatpush3.msra.mxu0 %v2080_v15  ;;  %1644 = vmatprep.subr.mxu1 %v2009_v3 }
  0x26   :  { %1655 = vmatprep.subr.mxu0 %v2009_v3  ;;  %1645 = vmatpush3.msra.mxu1 %v2344_v1 }
  0x27   :  { %1656 = vmatpush3.msra.mxu0 %v2083_v16  ;;  %1646 = vmatprep.subr.mxu1 %v2009_v3 }
  0x28   :  { %1657 = vmatprep.subr.mxu0 %v2009_v3  ;;  %1647 = vmatpush3.msra.mxu1 %v2351_v14 }
  0x29   :  { %1658 = vmatpush3.msra.mxu0 %v2088_v18  ;;  %1648 = vmatprep.subr.mxu1 %v2009_v3 }
  0x2a   :  { %1659 = vmatprep.subr.mxu0 %v2009_v3  ;;  %1649 = vmatpush3.msra.mxu1 %v2357_v33 }
  0x2b   :  { %1660 = vmatpush3.msra.mxu0 %v2095_v20  ;;  %1651 = vmatmul.mubr.f32.vlgmr.msra.gmra.mxu1 %v2221_v62 }
  0x2c   :  { %1661 = vmatprep.subr.mxu0 %v2009_v3  ;;  %1688 = vmatprep.subr.mxu1 %v2009_v3 }
  0x2d   :  { %1662 = vmatpush3.msra.mxu0 %v2098_v21  ;;  %1689 = vmatpush3.msra.mxu1 %v2046_v4 }
  0x2e   :  { %1663 = vmatprep.subr.mxu0 %v2009_v3  ;;  %1690 = vmatprep.subr.mxu1 %v2009_v3 }
  0x2f   :  { %1664 = vmatpush3.msra.mxu0 %v2125_v30  ;;  %1691 = vmatpush3.msra.mxu1 %v2048_v5 }
  0x30   :  { %1665 = vmatprep.subr.mxu0 %v2009_v3  ;;  %1692 = vmatprep.subr.mxu1 %v2009_v3 }
  0x31   :  { %1666 = vmatpush3.msra.mxu0 %v2135_v34  ;;  %1693 = vmatpush3.msra.mxu1 %v2050_v6 }
  0x32   :  { %1667 = vmatprep.subr.mxu0 %v2009_v3  ;;  %1694 = vmatprep.subr.mxu1 %v2009_v3 }
  0x33   :  { %1668 = vmatpush3.msra.mxu0 %v2160_v43  ;;  %1695 = vmatpush3.msra.mxu1 %v2062_v10 }
  0x34   :  { %1669 = vmatprep.subr.mxu0 %v2009_v3  ;;  %1696 = vmatprep.subr.mxu1 %v2009_v3 }
  0x35   :  { %1670 = vmatpush3.msra.mxu0 %v2172_v47  ;;  %1697 = vmatpush3.msra.mxu1 %v2064_v11 }
  0x36   :  { %1671 = vmatprep.subr.mxu0 %v2009_v3  ;;  %1698 = vmatprep.subr.mxu1 %v2009_v3 }
  0x37   :  { %1672 = vmatpush3.msra.mxu0 %v2199_v55  ;;  %1699 = vmatpush3.msra.mxu1 %v2066_v12 }
  0x38   :  { %1673 = vmatprep.subr.mxu0 %v2009_v3  ;;  %1700 = vmatprep.subr.mxu1 %v2009_v3 }
  0x39   :  { %1674 = vmatpush3.msra.mxu0 %v2218_v61  ;;  %1701 = vmatpush3.msra.mxu1 %v2085_v17 }
  0x3a   :  { %1675 = vmatprep.subr.mxu0 %v2009_v3  ;;  %1702 = vmatprep.subr.mxu1 %v2009_v3 }
  0x3b   :  { %1676 = vmatpush3.msra.mxu0 %v2240_v8  ;;  %1703 = vmatpush3.msra.mxu1 %v2110_v25 }
  0x3c   :  { %1677 = vmatprep.subr.mxu0 %v2009_v3  ;;  %1704 = vmatprep.subr.mxu1 %v2009_v3 }
  0x3d   :  { %1678 = vmatpush3.msra.mxu0 %v2260_v31  ;;  %1705 = vmatpush3.msra.mxu1 %v2119_v28 }
  0x3e   :  { %1679 = vmatprep.subr.mxu0 %v2009_v3  ;;  %1706 = vmatprep.subr.mxu1 %v2009_v3 }
  0x3f   :  { %1680 = vmatpush3.msra.mxu0 %v2276_v41  ;;  %1707 = vmatpush3.msra.mxu1 %v2138_v35 }
  0x40   :  { %1681 = vmatprep.subr.mxu0 %v2009_v3  ;;  %1708 = vmatprep.subr.mxu1 %v2009_v3 }
  0x41   :  { %1682 = vmatpush3.msra.mxu0 %v2291_v54  ;;  %1709 = vmatpush3.msra.mxu1 %v2166_v45 }
  0x42   :  { %1683 = vmatprep.subr.mxu0 %v2009_v3  ;;  %1710 = vmatprep.subr.mxu1 %v2009_v3 }
  0x43   :  { %1684 = vmatpush3.msra.mxu0 %v2305_v50  ;;  %1685 = vmatprep.mubr.msk.f32.mxu0 %vm2010_vm0, %v2009_v3 }
  0x44   :  { %1711 = vmatpush3.msra.mxu1 %v2176_v48  ;;  %1686 = vmatmul.mubr.f32.vlgmr.msra.gmra.mxu0 %v2257_v26  ;;  %v2768_v26 = vld [vmem:[#allocation11_spill] sm:$0xff] }
  0x45   :  { %1712 = vmatprep.subr.mxu1 %v2009_v3  ;;  %1723 = vmatprep.subr.mxu0 %v2009_v3 }
  0x46   :  { %1713 = vmatpush3.msra.mxu1 %v2212_v59  ;;  %1724 = vmatpush3.msra.mxu0 %v2102_v22 }
  0x47   :  { %1714 = vmatprep.subr.mxu1 %v2009_v3  ;;  %1725 = vmatprep.subr.mxu0 %v2009_v3 }
  0x48   :  { %1715 = vmatpush3.msra.mxu1 %v2225_v63  ;;  %1726 = vmatpush3.msra.mxu0 %v2105_v23 }
  0x49   :  { %1716 = vmatprep.subr.mxu1 %v2009_v3  ;;  %1727 = vmatprep.subr.mxu0 %v2009_v3 }
  0x4a   :  { %1717 = vmatpush3.msra.mxu1 %v2246_v13  ;;  %1728 = vmatpush3.msra.mxu0 %v2108_v24 }
  0x4b   :  { %1718 = vmatprep.subr.mxu1 %v2009_v3  ;;  %1729 = vmatprep.subr.mxu0 %v2009_v3 }
  0x4c   :  { %1719 = vmatpush3.msra.mxu1 %v2264_v32  ;;  %1720 = vmatprep.mubr.msk.f32.mxu1 %vm2010_vm0, %v2009_v3 }
  0x4d   :  { %1730 = vmatpush3.msra.mxu0 %v2117_v27  ;;  %1721 = vmatmul.mubr.f32.vlgmr.msra.gmra.mxu1 %v2762_v51 }
  0x4e   :  { %1731 = vmatprep.subr.mxu0 %v2009_v3  ;;  %1758 = vmatprep.subr.mxu1 %v2009_v3 }
  0x4f   :  { %1732 = vmatpush3.msra.mxu0 %v2122_v29  ;;  %1759 = vmatpush3.msra.mxu1 %v2046_v4 }
  0x50   :  { %1733 = vmatprep.subr.mxu0 %v2009_v3  ;;  %1760 = vmatprep.subr.mxu1 %v2009_v3 }
  0x51   :  { %1734 = vmatpush3.msra.mxu0 %v2151_v40  ;;  %1761 = vmatpush3.msra.mxu1 %v2048_v5 }
  0x52   :  { %1735 = vmatprep.subr.mxu0 %v2009_v3  ;;  %1762 = vmatprep.subr.mxu1 %v2009_v3 }
  0x53   :  { %1736 = vmatpush3.msra.mxu0 %v2169_v46  ;;  %1763 = vmatpush3.msra.mxu1 %v2050_v6 }
  0x54   :  { %1737 = vmatprep.subr.mxu0 %v2009_v3  ;;  %1764 = vmatprep.subr.mxu1 %v2009_v3 }
  0x55   :  { %1738 = vmatpush3.msra.mxu0 %v2193_v53  ;;  %1765 = vmatpush3.msra.mxu1 %v2062_v10 }
  0x56   :  { %1739 = vmatprep.subr.mxu0 %v2009_v3  ;;  %1766 = vmatprep.subr.mxu1 %v2009_v3 }
  0x57   :  { %1740 = vmatpush3.msra.mxu0 %v2206_v57  ;;  %1767 = vmatpush3.msra.mxu1 %v2064_v11 }
  0x58   :  { %1741 = vmatprep.subr.mxu0 %v2009_v3  ;;  %1768 = vmatprep.subr.mxu1 %v2009_v3 }
  0x59   :  { %1742 = vmatpush3.msra.mxu0 %v2234_v2  ;;  %1769 = vmatpush3.msra.mxu1 %v2066_v12 }
  0x5a   :  { %1743 = vmatprep.subr.mxu0 %v2009_v3  ;;  %1770 = vmatprep.subr.mxu1 %v2009_v3 }
  0x5b   :  { %1744 = vmatpush3.msra.mxu0 %v2253_v19  ;;  %1771 = vmatpush3.msra.mxu1 %v2085_v17 }
  0x5c   :  { %1745 = vmatprep.subr.mxu0 %v2009_v3  ;;  %1772 = vmatprep.subr.mxu1 %v2009_v3 }
  0x5d   :  { %1746 = vmatpush3.msra.mxu0 %v2273_v39  ;;  %1773 = vmatpush3.msra.mxu1 %v2110_v25 }
  0x5e   :  { %1747 = vmatprep.subr.mxu0 %v2009_v3  ;;  %1774 = vmatprep.subr.mxu1 %v2009_v3 }
  0x5f   :  { %1748 = vmatpush3.msra.mxu0 %v2288_v58  ;;  %1775 = vmatpush3.msra.mxu1 %v2119_v28 }
  0x60   :  { %1749 = vmatprep.subr.mxu0 %v2009_v3  ;;  %1776 = vmatprep.subr.mxu1 %v2009_v3 }
  0x61   :  { %1750 = vmatpush3.msra.mxu0 %v2302_v52  ;;  %1777 = vmatpush3.msra.mxu1 %v2138_v35 }
  0x62   :  { %1751 = vmatprep.subr.mxu0 %v2009_v3  ;;  %1778 = vmatprep.subr.mxu1 %v2009_v3 }
  0x63   :  { %1752 = vmatpush3.msra.mxu0 %v2319_v7  ;;  %1779 = vmatpush3.msra.mxu1 %v2166_v45 }
  0x64   :  { %1753 = vmatprep.subr.mxu0 %v2009_v3  ;;  %1780 = vmatprep.subr.mxu1 %v2009_v3 }
  0x65   :  { %1754 = vmatpush3.msra.mxu0 %v2330_v36  ;;  %1755 = vmatprep.mubr.msk.f32.mxu0 %vm2010_vm0, %v2009_v3 }
  0x66   :  { %1781 = vmatpush3.msra.mxu1 %v2176_v48  ;;  %1756 = vmatmul.mubr.f32.vlgmr.msra.gmra.mxu0 %v2221_v62 }
  0x67   :  { %1782 = vmatprep.subr.mxu1 %v2009_v3  ;;  %1790 = vmatprep.mubr.msk.f32.mxu1 %vm2010_vm0, %v2009_v3 }
  0x68   :  { %1783 = vmatpush3.msra.mxu1 %v2212_v59  ;;  %1793 = vmatprep.subr.mxu0 %v2009_v3 }
  0x69   :  { %1784 = vmatprep.subr.mxu1 %v2009_v3  ;;  %1794 = vmatpush3.msra.mxu0 %v2046_v4 }
  0x6a   :  { %1785 = vmatpush3.msra.mxu1 %v2225_v63  ;;  %1795 = vmatprep.subr.mxu0 %v2009_v3 }
  0x6b   :  { %1786 = vmatprep.subr.mxu1 %v2009_v3  ;;  %1796 = vmatpush3.msra.mxu0 %v2048_v5 }
  0x6c   :  { %1787 = vmatpush3.msra.mxu1 %v2246_v13  ;;  %1797 = vmatprep.subr.mxu0 %v2009_v3 }
  0x6d   :  { %1788 = vmatprep.subr.mxu1 %v2009_v3  ;;  %1798 = vmatpush3.msra.mxu0 %v2050_v6 }
  0x6e   :  { %1789 = vmatpush3.msra.mxu1 %v2264_v32  ;;  %1799 = vmatprep.subr.mxu0 %v2009_v3 }
  0x6f   :  { %1791 = vmatmul.mubr.f32.vlgmr.msra.gmra.mxu1 %v2221_v62  ;;  %1828 = vmatprep.subr.mxu1 %v2009_v3  ;;  %v2766_v62 = vld [vmem:[#allocation9_spill] sm:$0xff] }
  0x70   :  { %1829 = vmatpush3.msra.mxu1 %v2144_v37  ;;  %1800 = vmatpush3.msra.mxu0 %v2062_v10  ;;  %v2763_v37 = vld [vmem:[#allocation6_spill] sm:$0xff] }
  0x71   :  { %1830 = vmatprep.subr.mxu1 %v2009_v3  ;;  %1801 = vmatprep.subr.mxu0 %v2009_v3 }
  0x72   :  { %1831 = vmatpush3.msra.mxu1 %v2146_v38  ;;  %1802 = vmatpush3.msra.mxu0 %v2064_v11  ;;  %v2764_v38 = vld [vmem:[#allocation7_spill] sm:$0xff] }
  0x73   :  { %1832 = vmatprep.subr.mxu1 %v2009_v3  ;;  %1803 = vmatprep.subr.mxu0 %v2009_v3 }
  0x74   :  { %1833 = vmatpush3.msra.mxu1 %v2164_v44  ;;  %1804 = vmatpush3.msra.mxu0 %v2066_v12  ;;  %v2765_v44 = vld [vmem:[#allocation8_spill] sm:$0xff] }
  0x75   :  { %1834 = vmatprep.subr.mxu1 %v2009_v3  ;;  %1805 = vmatprep.subr.mxu0 %v2009_v3 }
  0x76   :  { %1835 = vmatpush3.msra.mxu1 %v2763_v37  ;;  %1806 = vmatpush3.msra.mxu0 %v2085_v17 }
  0x77   :  { %1836 = vmatprep.subr.mxu1 %v2009_v3  ;;  %1807 = vmatprep.subr.mxu0 %v2009_v3 }
  0x78   :  { %1837 = vmatpush3.msra.mxu1 %v2764_v38  ;;  %1808 = vmatpush3.msra.mxu0 %v2110_v25 }
  0x79   :  { %1838 = vmatprep.subr.mxu1 %v2009_v3  ;;  %1809 = vmatprep.subr.mxu0 %v2009_v3 }
  0x7a   :  { %1839 = vmatpush3.msra.mxu1 %v2765_v44  ;;  %1810 = vmatpush3.msra.mxu0 %v2119_v28 }
  0x7b   :  { %1840 = vmatprep.subr.mxu1 %v2009_v3  ;;  %1811 = vmatprep.subr.mxu0 %v2009_v3 }
  0x7c   :  { %1841 = vmatpush3.msra.mxu1 %v2766_v62  ;;  %1812 = vmatpush3.msra.mxu0 %v2138_v35 }
  0x7d   :  { %1842 = vmatprep.subr.mxu1 %v2009_v3  ;;  %1813 = vmatprep.subr.mxu0 %v2009_v3 }
  0x7e   :  { %1843 = vmatpush3.msra.mxu1 %v2767_v0  ;;  %1814 = vmatpush3.msra.mxu0 %v2166_v45 }
  0x7f   :  { %1844 = vmatprep.subr.mxu1 %v2009_v3  ;;  %1815 = vmatprep.subr.mxu0 %v2009_v3 }
  0x80   :  { %1845 = vmatpush3.msra.mxu1 %v2768_v26  ;;  %1816 = vmatpush3.msra.mxu0 %v2176_v48 }
  0x81   :  { %1846 = vmatprep.subr.mxu1 %v2009_v3  ;;  %1817 = vmatprep.subr.mxu0 %v2009_v3 }
  0x82   :  { %1847 = vmatpush3.msra.mxu1 %v2769_v42  ;;  %1860 = vmatprep.mubr.msk.f32.mxu1 %vm2010_vm0, %v2009_v3 }
  0x83   :  { %1848 = vmatprep.subr.mxu1 %v2009_v3  ;;  %1818 = vmatpush3.msra.mxu0 %v2212_v59 }
  0x84   :  { %1849 = vmatpush3.msra.mxu1 %v2311_v60  ;;  %1819 = vmatprep.subr.mxu0 %v2009_v3 }
  0x85   :  { %1850 = vmatprep.subr.mxu1 %v2009_v3  ;;  %1820 = vmatpush3.msra.mxu0 %v2225_v63 }
  0x86   :  { %1851 = vmatpush3.msra.mxu1 %v2325_v49  ;;  %1821 = vmatprep.subr.mxu0 %v2009_v3 }
  0x87   :  { %1852 = vmatprep.subr.mxu1 %v2009_v3  ;;  %1822 = vmatpush3.msra.mxu0 %v2246_v13 }
  0x88   :  { %1853 = vmatpush3.msra.mxu1 %v2336_v56  ;;  %1823 = vmatprep.subr.mxu0 %v2009_v3 }
  0x89   :  { %1854 = vmatprep.subr.mxu1 %v2009_v3  ;;  %1824 = vmatpush3.msra.mxu0 %v2264_v32 }
  0x8a   :  { %1855 = vmatpush3.msra.mxu1 %v2344_v1  ;;  %1825 = vmatprep.mubr.msk.f32.mxu0 %vm2010_vm0, %v2009_v3 }
  0x8b   :  { %1856 = vmatprep.subr.mxu1 %v2009_v3  ;;  %1863 = vmatprep.subr.mxu0 %v2009_v3 }
  0x8c   :  { %1857 = vmatpush3.msra.mxu1 %v2351_v14 }
  0x8d   :  { %1858 = vmatprep.subr.mxu1 %v2009_v3 }
  0x8e   :  { %1859 = vmatpush3.msra.mxu1 %v2357_v33  ;;  %v2770_v33 = vld [vmem:[#allocation5_spill] sm:$0xff] }
  0x8f   :  { %1898 = vmatprep.subr.mxu1 %v2009_v3 }
  0xe4   :  { %v123_v56 = vpop.f32.mrf.mxu0 }
  0xe6   :  { %v1617_v60 = vpop.f32.mrf.mxu0 }
  0xeb   :  { %v274_v49 = vpop.f32.mrf.mxu1 }
  0xec   :  { %v275_v62 = vadd.f32 %v274_v49, %v123_v56 }
  0xed   :  { %v1652_v9 = vpop.f32.mrf.mxu1 }
 0x104   :  { %v378_v1 = vpop.f32.mrf.mxu0 }
 0x105   :  { %v379_v26 = vadd.f32 %v378_v1, %v275_v62 }
 0x106   :  { %v1687_v51 = vpop.f32.mrf.mxu0 }
 0x10d   :  { %v467_v37 = vpop.f32.mrf.mxu1 }
 0x10e   :  { %v468_v42 = vadd.f32 %v467_v37, %v379_v26 }
 0x10f   :  { %v1722_v38 = vpop.f32.mrf.mxu1 }
 0x126   :  { %v586_v44 = vpop.f32.mrf.mxu0 }
 0x127   :  { %v587_v14 = vadd.f32 %v586_v44, %v468_v42 }
 0x128   :  { %v1757_v0 = vpop.f32.mrf.mxu0 }
 0x12f   :  { %v673_v36 = vpop.f32.mrf.mxu1 }
 0x130   :  { %v674_v7 = vadd.f32 %v673_v36, %v587_v14 }
 0x131   :  { %v1792_v52 = vpop.f32.mrf.mxu1 }
 0x132   :  { %v2573_v58 = vsub.f32 %v2770_v33, %v674_v7 }
 0x134   :  { %v678_v60 = vmul.f32 %v2573_v58, %v2573_v58 }
 0x136   :  { %v2577_v9 = vand.u32 4294901760, %v678_v60 }
 0x138   :  { %v2580_v51 = vsub.f32 %v678_v60, %v2577_v9  ;;  %1861 = vmatmul.mubr.f32.vlgmr.msra.gmra.mxu1 %v2577_v9 }
 0x139   :  { %1899 = vmatpush3.msra.mxu1 %v2046_v4  ;;  %1930 = vmatprep.mubr.msk.f32.mxu1 %vm2010_vm0, %v2009_v3 }
 0x13a   :  { %1900 = vmatprep.subr.mxu1 %v2009_v3  ;;  %v762_v52 = vand.u32 4294901760, %v2580_v51 }
 0x13b   :  { %1901 = vmatpush3.msra.mxu1 %v2048_v5 }
 0x13c   :  { %1902 = vmatprep.subr.mxu1 %v2009_v3  ;;  %v763_v7 = vsub.f32 %v2580_v51, %v762_v52 }
 0x13d   :  { %1903 = vmatpush3.msra.mxu1 %v2050_v6 }
 0x13e   :  { %1904 = vmatprep.subr.mxu1 %v2009_v3  ;;  %v764_v36 = vand.u32 4294901760, %v763_v7 }
 0x13f   :  { %1905 = vmatpush3.msra.mxu1 %v2062_v10 }
 0x140   :  { %1906 = vmatprep.subr.mxu1 %v2009_v3  ;;  %1826 = vmatmul.mubr.f32.vlgmr.msra.gmra.mxu0 %v764_v36 }
 0x141   :  { %1864 = vmatpush3.msra.mxu0 %v2080_v15  ;;  %1907 = vmatpush3.msra.mxu1 %v2064_v11 }
 0x142   :  { %1865 = vmatprep.subr.mxu0 %v2009_v3  ;;  %1908 = vmatprep.subr.mxu1 %v2009_v3 }
 0x143   :  { %1866 = vmatpush3.msra.mxu0 %v2083_v16  ;;  %1909 = vmatpush3.msra.mxu1 %v2066_v12 }
 0x144   :  { %1867 = vmatprep.subr.mxu0 %v2009_v3  ;;  %1910 = vmatprep.subr.mxu1 %v2009_v3 }
 0x145   :  { %1868 = vmatpush3.msra.mxu0 %v2088_v18  ;;  %1911 = vmatpush3.msra.mxu1 %v2085_v17 }
 0x146   :  { %1869 = vmatprep.subr.mxu0 %v2009_v3  ;;  %1912 = vmatprep.subr.mxu1 %v2009_v3 }
 0x147   :  { %1870 = vmatpush3.msra.mxu0 %v2095_v20  ;;  %1913 = vmatpush3.msra.mxu1 %v2110_v25 }
 0x148   :  { %1871 = vmatprep.subr.mxu0 %v2009_v3  ;;  %1914 = vmatprep.subr.mxu1 %v2009_v3 }
 0x149   :  { %1872 = vmatpush3.msra.mxu0 %v2098_v21  ;;  %1915 = vmatpush3.msra.mxu1 %v2119_v28 }
 0x14a   :  { %1873 = vmatprep.subr.mxu0 %v2009_v3  ;;  %1916 = vmatprep.subr.mxu1 %v2009_v3 }
 0x14b   :  { %1874 = vmatpush3.msra.mxu0 %v2125_v30  ;;  %1917 = vmatpush3.msra.mxu1 %v2138_v35 }
 0x14c   :  { %1875 = vmatprep.subr.mxu0 %v2009_v3  ;;  %1918 = vmatprep.subr.mxu1 %v2009_v3 }
 0x14d   :  { %1876 = vmatpush3.msra.mxu0 %v2135_v34  ;;  %1919 = vmatpush3.msra.mxu1 %v2166_v45 }
 0x14e   :  { %1877 = vmatprep.subr.mxu0 %v2009_v3  ;;  %1920 = vmatprep.subr.mxu1 %v2009_v3 }
 0x14f   :  { %1878 = vmatpush3.msra.mxu0 %v2160_v43  ;;  %1921 = vmatpush3.msra.mxu1 %v2176_v48 }
 0x150   :  { %1879 = vmatprep.subr.mxu0 %v2009_v3  ;;  %1922 = vmatprep.subr.mxu1 %v2009_v3 }
 0x151   :  { %1880 = vmatpush3.msra.mxu0 %v2172_v47  ;;  %1923 = vmatpush3.msra.mxu1 %v2212_v59 }
 0x152   :  { %1881 = vmatprep.subr.mxu0 %v2009_v3  ;;  %1924 = vmatprep.subr.mxu1 %v2009_v3 }
 0x153   :  { %1882 = vmatpush3.msra.mxu0 %v2199_v55  ;;  %1925 = vmatpush3.msra.mxu1 %v2225_v63  ;;  %v1335_v55 = vstv %s2733_s1 }
 0x154   :  { %1883 = vmatprep.subr.mxu0 %v2009_v3  ;;  %1926 = vmatprep.subr.mxu1 %v2009_v3 }
 0x155   :  { %1884 = vmatpush3.msra.mxu0 %v2218_v61  ;;  %1927 = vmatpush3.msra.mxu1 %v2246_v13 }
 0x156   :  { %1885 = vmatprep.subr.mxu0 %v2009_v3  ;;  %1928 = vmatprep.subr.mxu1 %v2009_v3 }
 0x157   :  { %1886 = vmatpush3.msra.mxu0 %v2240_v8  ;;  %1929 = vmatpush3.msra.mxu1 %v2264_v32 }
 0x158   :  { %1887 = vmatprep.subr.mxu0 %v2009_v3  ;;  %1931 = vmatmul.mubr.f32.vlgmr.msra.gmra.mxu1 %v762_v52 }
 0x159   :  { %1968 = vmatprep.subr.mxu1 %v2009_v3  ;;  %1888 = vmatpush3.msra.mxu0 %v2260_v31 }
 0x15a   :  { %1969 = vmatpush3.msra.mxu1 %v2046_v4  ;;  %1889 = vmatprep.subr.mxu0 %v2009_v3  ;;  %v2771_v4 = vld [vmem:[#allocation12_spill] sm:$0xff] }
 0x15b   :  { %1970 = vmatprep.subr.mxu1 %v2009_v3  ;;  %1890 = vmatpush3.msra.mxu0 %v2276_v41 }
 0x15c   :  { %1971 = vmatpush3.msra.mxu1 %v2048_v5  ;;  %1891 = vmatprep.subr.mxu0 %v2009_v3  ;;  %v2772_v5 = vld [vmem:[#allocation14_spill] sm:$0xff] }
 0x15d   :  { %1972 = vmatprep.subr.mxu1 %v2009_v3  ;;  %1892 = vmatpush3.msra.mxu0 %v2291_v54 }
 0x15e   :  { %1973 = vmatpush3.msra.mxu1 %v2050_v6  ;;  %1893 = vmatprep.subr.mxu0 %v2009_v3  ;;  %v2773_v6 = vld [vmem:[#allocation15_spill] sm:$0xff] }
 0x15f   :  { %1974 = vmatprep.subr.mxu1 %v2009_v3  ;;  %1894 = vmatpush3.msra.mxu0 %v2305_v50 }
 0x160   :  { %1895 = vmatprep.mubr.msk.f32.mxu0 %vm2010_vm0, %v2009_v3  ;;  %1975 = vmatpush3.msra.mxu1 %v2062_v10  ;;  %v2774_v10 = vld [vmem:[#allocation16_spill] sm:$0xff] }
 0x161   :  { %1896 = vmatmul.mubr.f32.vlgmr.msra.gmra.mxu0 %v2580_v51  ;;  %1933 = vmatprep.subr.mxu0 %v2009_v3 }
 0x162   :  { %1976 = vmatprep.subr.mxu1 %v2009_v3  ;;  %1934 = vmatpush3.msra.mxu0 %v2102_v22 }
 0x163   :  { %1977 = vmatpush3.msra.mxu1 %v2064_v11  ;;  %1935 = vmatprep.subr.mxu0 %v2009_v3 }
 0x164   :  { %1978 = vmatprep.subr.mxu1 %v2009_v3  ;;  %1936 = vmatpush3.msra.mxu0 %v2105_v23 }
 0x165   :  { %1979 = vmatpush3.msra.mxu1 %v2066_v12  ;;  %1937 = vmatprep.subr.mxu0 %v2009_v3 }
 0x166   :  { %1980 = vmatprep.subr.mxu1 %v2009_v3  ;;  %1938 = vmatpush3.msra.mxu0 %v2108_v24 }
 0x167   :  { %1981 = vmatpush3.msra.mxu1 %v2085_v17  ;;  %1939 = vmatprep.subr.mxu0 %v2009_v3 }
 0x168   :  { %1982 = vmatprep.subr.mxu1 %v2009_v3  ;;  %1940 = vmatpush3.msra.mxu0 %v2117_v27 }
 0x169   :  { %1983 = vmatpush3.msra.mxu1 %v2110_v25  ;;  %1941 = vmatprep.subr.mxu0 %v2009_v3 }
 0x16a   :  { %1984 = vmatprep.subr.mxu1 %v2009_v3  ;;  %1942 = vmatpush3.msra.mxu0 %v2122_v29 }
 0x16b   :  { %1985 = vmatpush3.msra.mxu1 %v2119_v28  ;;  %1943 = vmatprep.subr.mxu0 %v2009_v3 }
 0x16c   :  { %1986 = vmatprep.subr.mxu1 %v2009_v3  ;;  %1944 = vmatpush3.msra.mxu0 %v2151_v40 }
 0x16d   :  { %1987 = vmatpush3.msra.mxu1 %v2138_v35  ;;  %1945 = vmatprep.subr.mxu0 %v2009_v3 }
 0x16e   :  { %1988 = vmatprep.subr.mxu1 %v2009_v3  ;;  %1946 = vmatpush3.msra.mxu0 %v2169_v46 }
 0x16f   :  { %1989 = vmatpush3.msra.mxu1 %v2166_v45  ;;  %1947 = vmatprep.subr.mxu0 %v2009_v3 }
 0x170   :  { %1990 = vmatprep.subr.mxu1 %v2009_v3  ;;  %1948 = vmatpush3.msra.mxu0 %v2193_v53 }
 0x171   :  { %1991 = vmatpush3.msra.mxu1 %v2176_v48  ;;  %1949 = vmatprep.subr.mxu0 %v2009_v3  ;;  %v1331_v48 = vstv %s2732_s0 }
 0x172   :  { %1992 = vmatprep.subr.mxu1 %v2009_v3  ;;  %1950 = vmatpush3.msra.mxu0 %v2206_v57 }
 0x173   :  { %1993 = vmatpush3.msra.mxu1 %v2212_v59  ;;  %1951 = vmatprep.subr.mxu0 %v2009_v3 }
 0x174   :  { %1994 = vmatprep.subr.mxu1 %v2009_v3  ;;  %1952 = vmatpush3.msra.mxu0 %v2234_v2 }
 0x175   :  { %1995 = vmatpush3.msra.mxu1 %v2225_v63  ;;  %1953 = vmatprep.subr.mxu0 %v2009_v3 }
 0x176   :  { %1996 = vmatprep.subr.mxu1 %v2009_v3  ;;  %1954 = vmatpush3.msra.mxu0 %v2253_v19 }
 0x177   :  { %1997 = vmatpush3.msra.mxu1 %v2246_v13  ;;  %1955 = vmatprep.subr.mxu0 %v2009_v3 }
 0x178   :  { %1998 = vmatprep.subr.mxu1 %v2009_v3  ;;  %1956 = vmatpush3.msra.mxu0 %v2273_v39 }
 0x179   :  { %1999 = vmatpush3.msra.mxu1 %v2264_v32  ;;  %2000 = vmatprep.mubr.msk.f32.mxu1 %vm2010_vm0, %v2009_v3 }
 0x17a   :  { %1957 = vmatprep.subr.mxu0 %v2009_v3  ;;  %2001 = vmatmul.mubr.f32.vlgmr.msra.gmra.mxu1 %v2577_v9 }
 0x17b   :  { %1958 = vmatpush3.msra.mxu0 %v2771_v4  ;;  %1965 = vmatprep.mubr.msk.f32.mxu0 %vm2010_vm0, %v2009_v3 }
 0x17c   :  { %1959 = vmatprep.subr.mxu0 %v2009_v3 }
 0x17d   :  { %1960 = vmatpush3.msra.mxu0 %v2772_v5 }
 0x17e   :  { %1961 = vmatprep.subr.mxu0 %v2009_v3 }
 0x17f   :  { %1962 = vmatpush3.msra.mxu0 %v2773_v6 }
 0x180   :  { %1963 = vmatprep.subr.mxu0 %v2009_v3 }
 0x181   :  { %1964 = vmatpush3.msra.mxu0 %v2774_v10 }
 0x182   :  { %1966 = vmatmul.mubr.f32.vlgmr.msra.gmra.mxu0 %v2577_v9 }
 0x1f8   :  { %v917_v11 = vpop.f32.mrf.mxu1 }
 0x1fa   :  { %v1862_v12 = vpop.f32.mrf.mxu1 }
 0x200   :  { %v766_v15 = vpop.f32.mrf.mxu0 }
 0x201   :  { %v918_v23 = vadd.f32 %v917_v11, %v766_v15 }
 0x202   :  { %v1827_v16 = vpop.f32.mrf.mxu0 }
 0x218   :  { %v1110_v17 = vpop.f32.mrf.mxu1 }
 0x21a   :  { %v1932_v18 = vpop.f32.mrf.mxu1 }
 0x221   :  { %v1021_v20 = vpop.f32.mrf.mxu0 }
 0x222   :  { %v1022_v25 = vadd.f32 %v1021_v20, %v918_v23 }
 0x223   :  { %v1897_v21 = vpop.f32.mrf.mxu0 }
 0x224   :  { %v1111_v27 = vadd.f32 %v1110_v17, %v1022_v25 }
 0x23a   :  { %v1316_v22 = vpop.f32.mrf.mxu1 }
 0x23c   :  { %v2002_v24 = vpop.f32.mrf.mxu1 }
 0x242   :  { %v1229_v28 = vpop.f32.mrf.mxu0 }
 0x243   :  { %v1230_v29 = vadd.f32 %v1229_v28, %v1111_v27 }
 0x244   :  { %v1967_v3 = vpop.f32.mrf.mxu0 }
 0x245   :  { %v1317_v30 = vadd.f32 %v1316_v22, %v1230_v29 }
 0x247   :  { %v1320_v34 = vmul.f32 1.032258, %v1317_v30 }
 0x249   :  { %2005 = vrsqrt.f32 %v1320_v34  ;;  %vm1323_vm1 = vcmp.eq.f32.partialorder %v1320_v34, inf  ;;  %v1326_v43 = vand.u32 2147483648, %v1320_v34  ;;  %vm1325_vm2 = vcmp.eq.f32.partialorder %v1320_v34, 0.0 }
 0x256   :  { %v2006_v35 = vpop.eup %2005 }
 0x257   :  { %v1322_v40 = vmul.f32 %v2006_v35, %v1320_v34 }
 0x259   :  { %v1324_v45 = vsel %vm1323_vm1, %v1320_v34, %v1322_v40 }
 0x25a   :  { %v1327_v46 = vsel %vm1325_vm2, %v1326_v43, %v1324_v45 }
 0x25b   :  { %v1328_v47 = vadd.f32 1e-06, %v1327_v46 }
 0x25d   :  { %2007 = vrcp.f32 %v1328_v47 }
 0x26a   :  { %v2008_v50 = vpop.eup %2007 }
 0x26b   :  { %v1332_v53 = vmul.f32 %v2008_v50, %v1331_v48 }
 0x26d   :  { %v1334_v57 = vmul.f32 %v1332_v53, %v2573_v58 }
 0x26f   :  { %v1336_v59 = vadd.f32 %v1335_v55, %v1334_v57 }
 0x271   :  { %1337 = vst [vmem:[#allocation4] sm:$0xff] %v1336_v59 }
 0x278   :  { %v1356_v61 = vld [vmem:[#allocation4] sm:$0xf] }
 0x279   :  { %1357 = vst [vmem:[%s2736_s4] sm:$0xf] %v1356_v61 }

</bundles_post_ra>
